<compile_context>
chip_gen: v7x
topology: tpu7x:2x2x1
jax: 0.10.0
libtpu: 0.0.40
codegen_flags: <defaults>
</compile_context>

<pallas_src>
import jax
import jax.numpy as jnp
from jax.experimental import pallas as pl
from jax.experimental.pallas import tpu as pltpu

KSIZE = 3
EPS = 1e-5  # nn.BatchNorm2d default


def cba_forward(x_nchw, w_oihw, gamma, beta):
    """x_nchw: (N, Cin, H, W), w_oihw: (Cout, Cin, 3, 3), gamma/beta: (Cout,)."""
    N, Cin, H, W = x_nchw.shape
    Cout = w_oihw.shape[0]

    Wp = W + 2                    # padded row stride ('same' pad = 1 each side)
    L_ext = H * Wp                # extended per-image length (pad cols kept)
    HW = H * W
    # Pad bottom by 2 rows (instead of 1) so the largest shifted window
    # (offset 2*Wp+2, length H*Wp) stays inside the flattened buffer.
    flat_len = (H + 3) * Wp
    m_total = float(N * HW)       # BN statistics are over all N*H*W positions

    # ---- wrapper-side plumbing: ONE padding pass + free reshapes only ----
    xpad = jnp.pad(x_nchw.astype(jnp.float32), ((0, 0), (0, 0), (1, 2), (1, 1)))
    xflat = xpad.reshape(N, Cin, flat_len)                       # (N, Cin, (H+3)*Wp)

    # weights: OIHW -> (9, Cout, Cin), one (Cout, Cin) slab per (kh, kw) tap
    w_taps = jnp.transpose(w_oihw.astype(jnp.float32), (2, 3, 0, 1))
    w_taps = w_taps.reshape(KSIZE * KSIZE, Cout, Cin)

    g = gamma.reshape(Cout, 1).astype(jnp.float32)
    b = beta.reshape(Cout, 1).astype(jnp.float32)

    def kernel(x_ref, w_ref, g_ref, b_ref, o_ref, conv_sc, sum_sc, ssq_sc):
        # x_ref   : (Cin, flat_len)  flattened padded activation of batch n
        # w_ref   : (9, Cout, Cin)   per-tap weight slabs
        # g_ref   : (Cout, 1), b_ref: (Cout, 1)
        # o_ref   : (Cout, H*W)      lane-dense NCHW output block of batch n
        # conv_sc : (N, Cout, H*W)   conv tiles kept resident across phases
        # sum_sc / ssq_sc : (Cout, 1) global partial sums
        phase = pl.program_id(0)
        n = pl.program_id(1)

        @pl.when(phase == 0)
        def _conv_and_partial_stats():
            @pl.when(n == 0)
            def _init():
                sum_sc[...] = jnp.zeros_like(sum_sc)
                ssq_sc[...] = jnp.zeros_like(ssq_sc)

            # ---- 3x3 conv: 9 accumulated MXU dots over lane-shifted views ----
            acc = jnp.zeros((Cout, L_ext), jnp.float32)
            for kh in range(KSIZE):
                for kw in range(KSIZE):
                    off = kh * Wp + kw
                    tap = w_ref[kh * KSIZE + kw]                 # (Cout, Cin)
                    win = x_ref[:, off:off + L_ext]              # (Cin, H*Wp)
                    acc = acc + jnp.dot(tap, win,
                                        preferred_element_type=jnp.float32)

            # ---- compact: drop the 2 pad columns of every image row, keep the
            #      conv tile resident in VMEM scratch for phase 1 ----
            for i in range(H):
                conv_sc[n, :, i * W:(i + 1) * W] = acc[:, i * Wp:i * Wp + W]

            # ---- per-channel partial sums for GLOBAL BN stats ----
            tile = conv_sc[n]                                    # (Cout, H*W)
            sum_sc[...] += jnp.sum(tile, axis=1, keepdims=True)
            ssq_sc[...] += jnp.sum(tile * tile, axis=1, keepdims=True)

        @pl.when(phase == 1)
        def _normalize_and_store():
            inv_m = 1.0 / m_total
            mean = sum_sc[...] * inv_m                           # (Cout, 1)
            var = ssq_sc[...] * inv_m - mean * mean              # biased (train)
            scale = g_ref[...] * jax.lax.rsqrt(var + EPS)
            shift = b_ref[...] - mean * scale
            y = jnp.maximum(conv_sc[n] * scale + shift, 0.0)
            o_ref[...] = y.astype(o_ref.dtype)

    out = pl.pallas_call(
        kernel,
        out_shape=jax.ShapeDtypeStruct((N, Cout, HW), jnp.float32),
        grid=(2, N),                                    # (phase, batch tile)
        in_specs=[
            # Phase 1 never reads x; park its index on the last fetched block
            # so no extra input DMA is issued during phase 1.
            pl.BlockSpec((None, Cin, flat_len),
                         lambda p, n: (n * (1 - p) + (N - 1) * p, 0, 0)),
            pl.BlockSpec((KSIZE * KSIZE, Cout, Cin), lambda p, n: (0, 0, 0)),
            pl.BlockSpec((Cout, 1), lambda p, n: (0, 0)),
            pl.BlockSpec((Cout, 1), lambda p, n: (0, 0)),
        ],
        # Phase 0 never writes the output; keep its block index pinned to 0 so
        # no garbage writeback happens before phase 1 fills each block.
        out_specs=pl.BlockSpec((None, Cout, HW), lambda p, n: (n * p, 0, 0)),
        scratch_shapes=[
            pltpu.VMEM((N, Cout, HW), jnp.float32),     # resident conv tiles
            pltpu.VMEM((Cout, 1), jnp.float32),         # sum
            pltpu.VMEM((Cout, 1), jnp.float32),         # sum of squares
        ],
        compiler_params=pltpu.CompilerParams(
            # Both axes must be sequential: phase ordering matters, and the
            # batch axis accumulates global BN stats into shared scratch.
            dimension_semantics=("arbitrary", "arbitrary"),
            vmem_limit_bytes=32 * 1024 * 1024,
        ),
    )(xflat, w_taps, g, b)

    # (N, Cout, H*W) -> (N, Cout, H, W): contiguous, free reshape (no transpose).
    return out.reshape(N, Cout, H, W)


def _reference(x, w, gamma, beta):
    """Pure-JAX reference: Conv2d(pad=1, bias=False) + BN(train) + ReLU."""
    conv = jax.lax.conv_general_dilated(
        x, w, window_strides=(1, 1), padding=((1, 1), (1, 1)),
        dimension_numbers=("NCHW", "OIHW", "NCHW"))
    mean = conv.mean(axis=(0, 2, 3), keepdims=True)
    var = conv.var(axis=(0, 2, 3), keepdims=True)                # biased
    y = (conv - mean) * jax.lax.rsqrt(var + EPS)
    y = y * gamma.reshape(1, -1, 1, 1) + beta.reshape(1, -1, 1, 1)
    return jnp.maximum(y, 0.0)


if __name__ == "__main__":
    # Small shapes consistent with the module: batch=2, in_c=4, out_c=8, 16x16.
    N, C_IN, C_OUT, H, W = 2, 4, 8, 16, 16

    key = jax.random.PRNGKey(0)
    k_x, k_w, k_g, k_b = jax.random.split(key, 4)

    x = jax.random.normal(k_x, (N, C_IN, H, W), dtype=jnp.float32)
    fan_in = C_IN * KSIZE * KSIZE
    w = jax.random.normal(k_w, (C_OUT, C_IN, KSIZE, KSIZE),
                          dtype=jnp.float32) * (1.0 / jnp.sqrt(fan_in))
    gamma = 1.0 + 0.1 * jax.random.normal(k_g, (C_OUT,), dtype=jnp.float32)
    beta = 0.1 * jax.random.normal(k_b, (C_OUT,), dtype=jnp.float32)

    out = cba_forward(x, w, gamma, beta)
    jax.block_until_ready(out)
    assert out.shape == (N, C_OUT, H, W)

    ref = _reference(x, w, gamma, beta)
    assert jnp.allclose(out, ref, atol=2e-4, rtol=2e-4), \
        float(jnp.max(jnp.abs(out - ref)))

    print("KERNEL_OK")
</pallas_src>

<mosaic_0001>
module attributes {stable_mosaic.version = 11 : i64} {
  func.func @kernel(%arg0: i32, %arg1: i32, %arg2: memref<1x4x342xf32, #tpu.memory_space<vmem>>, %arg3: memref<9x8x4xf32, #tpu.memory_space<vmem>>, %arg4: memref<8x1xf32, #tpu.memory_space<vmem>>, %arg5: memref<8x1xf32, #tpu.memory_space<vmem>>, %arg6: memref<1x8x256xf32, #tpu.memory_space<vmem>>, %arg7: memref<2x8x256xf32, #tpu.memory_space<vmem>>, %arg8: memref<8x1xf32, #tpu.memory_space<vmem>>, %arg9: memref<8x1xf32, #tpu.memory_space<vmem>>) attributes {dimension_semantics = [#tpu.dimension_semantics<arbitrary>, #tpu.dimension_semantics<arbitrary>], iteration_bounds = array<i64: 2, 2>, scalar_prefetch = 0 : i64, scratch_operands = 3 : i64, tpu.core_type = #tpu.core_type<tc>, window_params = [{transform_indices = @transform_0, window_bounds = array<i64: 1, 4, 342>}, {pipeline_mode = #tpu.pipeline_mode<synchronous>, transform_indices = @transform_1, window_bounds = array<i64: 9, 8, 4>}, {pipeline_mode = #tpu.pipeline_mode<synchronous>, transform_indices = @transform_2, window_bounds = array<i64: 8, 1>}, {pipeline_mode = #tpu.pipeline_mode<synchronous>, transform_indices = @transform_3, window_bounds = array<i64: 8, 1>}, {transform_indices = @transform_4, window_bounds = array<i64: 1, 8, 256>}]} {
    %c0_i32 = arith.constant 0 : i32
    %0 = arith.cmpi eq, %arg0, %c0_i32 : i32
    %1 = arith.extui %0 : i1 to i32
    %c0_i32_0 = arith.constant 0 : i32
    %2 = arith.cmpi ne, %1, %c0_i32_0 : i32
    scf.if %2 {
      %c0_i32_2 = arith.constant 0 : i32
      %6 = arith.cmpi eq, %arg1, %c0_i32_2 : i32
      %7 = arith.extui %6 : i1 to i32
      %c0_i32_3 = arith.constant 0 : i32
      %8 = arith.cmpi ne, %7, %c0_i32_3 : i32
      scf.if %8 {
        %cst_81 = arith.constant 0.000000e+00 : f32
        %158 = vector.broadcast %cst_81 : f32 to vector<8x1xf32>
        %c0_82 = arith.constant 0 : index
        %c0_83 = arith.constant 0 : index
        %159 = vector.load %arg8[%c0_82, %c0_83] : memref<8x1xf32, #tpu.memory_space<vmem>>, vector<8x1xf32>
        tpu.vector_store %arg8[%c0_82, %c0_83], %158 {strides = array<i32>} : memref<8x1xf32, #tpu.memory_space<vmem>>, vector<8x1xf32>,
        %cst_84 = arith.constant 0.000000e+00 : f32
        %160 = vector.broadcast %cst_84 : f32 to vector<8x1xf32>
        %c0_85 = arith.constant 0 : index
        %c0_86 = arith.constant 0 : index
        %161 = vector.load %arg9[%c0_85, %c0_86] : memref<8x1xf32, #tpu.memory_space<vmem>>, vector<8x1xf32>
        tpu.vector_store %arg9[%c0_85, %c0_86], %160 {strides = array<i32>} : memref<8x1xf32, #tpu.memory_space<vmem>>, vector<8x1xf32>,
      } else {
      }
      %cst = arith.constant 0.000000e+00 : f32
      %9 = vector.broadcast %cst : f32 to vector<8x288xf32>
      %c0 = arith.constant 0 : index
      %c0_4 = arith.constant 0 : index
      %c0_5 = arith.constant 0 : index
      %10 = vector.load %arg3[%c0, %c0_4, %c0_5] : memref<9x8x4xf32, #tpu.memory_space<vmem>>, vector<1x8x4xf32>
      %11 = vector.shape_cast %10 : vector<1x8x4xf32> to vector<8x4xf32>
      %c0_6 = arith.constant 0 : index
      %c0_7 = arith.constant 0 : index
      %c0_8 = arith.constant 0 : index
      %12 = vector.load %arg2[%c0_6, %c0_7, %c0_8] : memref<1x4x342xf32, #tpu.memory_space<vmem>>, vector<1x4x288xf32>
      %13 = vector.shape_cast %12 : vector<1x4x288xf32> to vector<4x288xf32>
      %cst_9 = arith.constant dense<0.000000e+00> : vector<8x288xf32>
      %14 = tpu.matmul %11, %13, %cst_9 {dimension_numbers = #tpu.dot_dimension_numbers<[1], [0], [0], [1], [0, 0, 1, 1], [], []>} : vector<8x4xf32>, vector<4x288xf32>, vector<8x288xf32> -> vector<8x288xf32>
      %15 = arith.addf %9, %14 : vector<8x288xf32>
      %c1 = arith.constant 1 : index
      %c0_10 = arith.constant 0 : index
      %c0_11 = arith.constant 0 : index
      %16 = vector.load %arg3[%c1, %c0_10, %c0_11] : memref<9x8x4xf32, #tpu.memory_space<vmem>>, vector<1x8x4xf32>
      %17 = vector.shape_cast %16 : vector<1x8x4xf32> to vector<8x4xf32>
      %c0_12 = arith.constant 0 : index
      %c0_13 = arith.constant 0 : index
      %c1_14 = arith.constant 1 : index
      %18 = vector.load %arg2[%c0_12, %c0_13, %c1_14] : memref<1x4x342xf32, #tpu.memory_space<vmem>>, vector<1x4x288xf32>
      %19 = vector.shape_cast %18 : vector<1x4x288xf32> to vector<4x288xf32>
      %cst_15 = arith.constant dense<0.000000e+00> : vector<8x288xf32>
      %20 = tpu.matmul %17, %19, %cst_15 {dimension_numbers = #tpu.dot_dimension_numbers<[1], [0], [0], [1], [0, 0, 1, 1], [], []>} : vector<8x4xf32>, vector<4x288xf32>, vector<8x288xf32> -> vector<8x288xf32>
      %21 = arith.addf %15, %20 : vector<8x288xf32>
      %c2 = arith.constant 2 : index
      %c0_16 = arith.constant 0 : index
      %c0_17 = arith.constant 0 : index
      %22 = vector.load %arg3[%c2, %c0_16, %c0_17] : memref<9x8x4xf32, #tpu.memory_space<vmem>>, vector<1x8x4xf32>
      %23 = vector.shape_cast %22 : vector<1x8x4xf32> to vector<8x4xf32>
      %c0_18 = arith.constant 0 : index
      %c0_19 = arith.constant 0 : index
      %c2_20 = arith.constant 2 : index
      %24 = vector.load %arg2[%c0_18, %c0_19, %c2_20] : memref<1x4x342xf32, #tpu.memory_space<vmem>>, vector<1x4x288xf32>
      %25 = vector.shape_cast %24 : vector<1x4x288xf32> to vector<4x288xf32>
      %cst_21 = arith.constant dense<0.000000e+00> : vector<8x288xf32>
      %26 = tpu.matmul %23, %25, %cst_21 {dimension_numbers = #tpu.dot_dimension_numbers<[1], [0], [0], [1], [0, 0, 1, 1], [], []>} : vector<8x4xf32>, vector<4x288xf32>, vector<8x288xf32> -> vector<8x288xf32>
      %27 = arith.addf %21, %26 : vector<8x288xf32>
      %c3 = arith.constant 3 : index
      %c0_22 = arith.constant 0 : index
      %c0_23 = arith.constant 0 : index
      %28 = vector.load %arg3[%c3, %c0_22, %c0_23] : memref<9x8x4xf32, #tpu.memory_space<vmem>>, vector<1x8x4xf32>
      %29 = vector.shape_cast %28 : vector<1x8x4xf32> to vector<8x4xf32>
      %c0_24 = arith.constant 0 : index
      %c0_25 = arith.constant 0 : index
      %c18 = arith.constant 18 : index
      %30 = vector.load %arg2[%c0_24, %c0_25, %c18] : memref<1x4x342xf32, #tpu.memory_space<vmem>>, vector<1x4x288xf32>
      %31 = vector.shape_cast %30 : vector<1x4x288xf32> to vector<4x288xf32>
      %cst_26 = arith.constant dense<0.000000e+00> : vector<8x288xf32>
      %32 = tpu.matmul %29, %31, %cst_26 {dimension_numbers = #tpu.dot_dimension_numbers<[1], [0], [0], [1], [0, 0, 1, 1], [], []>} : vector<8x4xf32>, vector<4x288xf32>, vector<8x288xf32> -> vector<8x288xf32>
      %33 = arith.addf %27, %32 : vector<8x288xf32>
      %c4 = arith.constant 4 : index
      %c0_27 = arith.constant 0 : index
      %c0_28 = arith.constant 0 : index
      %34 = vector.load %arg3[%c4, %c0_27, %c0_28] : memref<9x8x4xf32, #tpu.memory_space<vmem>>, vector<1x8x4xf32>
      %35 = vector.shape_cast %34 : vector<1x8x4xf32> to vector<8x4xf32>
      %c0_29 = arith.constant 0 : index
      %c0_30 = arith.constant 0 : index
      %c19 = arith.constant 19 : index
      %36 = vector.load %arg2[%c0_29, %c0_30, %c19] : memref<1x4x342xf32, #tpu.memory_space<vmem>>, vector<1x4x288xf32>
      %37 = vector.shape_cast %36 : vector<1x4x288xf32> to vector<4x288xf32>
      %cst_31 = arith.constant dense<0.000000e+00> : vector<8x288xf32>
      %38 = tpu.matmul %35, %37, %cst_31 {dimension_numbers = #tpu.dot_dimension_numbers<[1], [0], [0], [1], [0, 0, 1, 1], [], []>} : vector<8x4xf32>, vector<4x288xf32>, vector<8x288xf32> -> vector<8x288xf32>
      %39 = arith.addf %33, %38 : vector<8x288xf32>
      %c5 = arith.constant 5 : index
      %c0_32 = arith.constant 0 : index
      %c0_33 = arith.constant 0 : index
      %40 = vector.load %arg3[%c5, %c0_32, %c0_33] : memref<9x8x4xf32, #tpu.memory_space<vmem>>, vector<1x8x4xf32>
      %41 = vector.shape_cast %40 : vector<1x8x4xf32> to vector<8x4xf32>
      %c0_34 = arith.constant 0 : index
      %c0_35 = arith.constant 0 : index
      %c20 = arith.constant 20 : index
      %42 = vector.load %arg2[%c0_34, %c0_35, %c20] : memref<1x4x342xf32, #tpu.memory_space<vmem>>, vector<1x4x288xf32>
      %43 = vector.shape_cast %42 : vector<1x4x288xf32> to vector<4x288xf32>
      %cst_36 = arith.constant dense<0.000000e+00> : vector<8x288xf32>
      %44 = tpu.matmul %41, %43, %cst_36 {dimension_numbers = #tpu.dot_dimension_numbers<[1], [0], [0], [1], [0, 0, 1, 1], [], []>} : vector<8x4xf32>, vector<4x288xf32>, vector<8x288xf32> -> vector<8x288xf32>
      %45 = arith.addf %39, %44 : vector<8x288xf32>
      %c6 = arith.constant 6 : index
      %c0_37 = arith.constant 0 : index
      %c0_38 = arith.constant 0 : index
      %46 = vector.load %arg3[%c6, %c0_37, %c0_38] : memref<9x8x4xf32, #tpu.memory_space<vmem>>, vector<1x8x4xf32>
      %47 = vector.shape_cast %46 : vector<1x8x4xf32> to vector<8x4xf32>
      %c0_39 = arith.constant 0 : index
      %c0_40 = arith.constant 0 : index
      %c36 = arith.constant 36 : index
      %48 = vector.load %arg2[%c0_39, %c0_40, %c36] : memref<1x4x342xf32, #tpu.memory_space<vmem>>, vector<1x4x288xf32>
      %49 = vector.shape_cast %48 : vector<1x4x288xf32> to vector<4x288xf32>
      %cst_41 = arith.constant dense<0.000000e+00> : vector<8x288xf32>
      %50 = tpu.matmul %47, %49, %cst_41 {dimension_numbers = #tpu.dot_dimension_numbers<[1], [0], [0], [1], [0, 0, 1, 1], [], []>} : vector<8x4xf32>, vector<4x288xf32>, vector<8x288xf32> -> vector<8x288xf32>
      %51 = arith.addf %45, %50 : vector<8x288xf32>
      %c7 = arith.constant 7 : index
      %c0_42 = arith.constant 0 : index
      %c0_43 = arith.constant 0 : index
      %52 = vector.load %arg3[%c7, %c0_42, %c0_43] : memref<9x8x4xf32, #tpu.memory_space<vmem>>, vector<1x8x4xf32>
      %53 = vector.shape_cast %52 : vector<1x8x4xf32> to vector<8x4xf32>
      %c0_44 = arith.constant 0 : index
      %c0_45 = arith.constant 0 : index
      %c37 = arith.constant 37 : index
      %54 = vector.load %arg2[%c0_44, %c0_45, %c37] : memref<1x4x342xf32, #tpu.memory_space<vmem>>, vector<1x4x288xf32>
      %55 = vector.shape_cast %54 : vector<1x4x288xf32> to vector<4x288xf32>
      %cst_46 = arith.constant dense<0.000000e+00> : vector<8x288xf32>
      %56 = tpu.matmul %53, %55, %cst_46 {dimension_numbers = #tpu.dot_dimension_numbers<[1], [0], [0], [1], [0, 0, 1, 1], [], []>} : vector<8x4xf32>, vector<4x288xf32>, vector<8x288xf32> -> vector<8x288xf32>
      %57 = arith.addf %51, %56 : vector<8x288xf32>
      %c8 = arith.constant 8 : index
      %c0_47 = arith.constant 0 : index
      %c0_48 = arith.constant 0 : index
      %58 = vector.load %arg3[%c8, %c0_47, %c0_48] : memref<9x8x4xf32, #tpu.memory_space<vmem>>, vector<1x8x4xf32>
      %59 = vector.shape_cast %58 : vector<1x8x4xf32> to vector<8x4xf32>
      %c0_49 = arith.constant 0 : index
      %c0_50 = arith.constant 0 : index
      %c38 = arith.constant 38 : index
      %60 = vector.load %arg2[%c0_49, %c0_50, %c38] : memref<1x4x342xf32, #tpu.memory_space<vmem>>, vector<1x4x288xf32>
      %61 = vector.shape_cast %60 : vector<1x4x288xf32> to vector<4x288xf32>
      %cst_51 = arith.constant dense<0.000000e+00> : vector<8x288xf32>
      %62 = tpu.matmul %59, %61, %cst_51 {dimension_numbers = #tpu.dot_dimension_numbers<[1], [0], [0], [1], [0, 0, 1, 1], [], []>} : vector<8x4xf32>, vector<4x288xf32>, vector<8x288xf32> -> vector<8x288xf32>
      %63 = arith.addf %57, %62 : vector<8x288xf32>
      %64 = vector.extract_strided_slice %63 {offsets = [0, 0], sizes = [8, 16], strides = [1, 1]} : vector<8x288xf32> to vector<8x16xf32>
      %65 = arith.index_cast %arg1 : i32 to index
      %c0_52 = arith.constant 0 : index
      %c0_53 = arith.constant 0 : index
      %66 = vector.load %arg7[%65, %c0_52, %c0_53] : memref<2x8x256xf32, #tpu.memory_space<vmem>>, vector<1x8x16xf32>
      %67 = vector.shape_cast %66 : vector<1x8x16xf32> to vector<8x16xf32>
      %68 = vector.shape_cast %64 : vector<8x16xf32> to vector<1x8x16xf32>
      tpu.vector_store %arg7[%65, %c0_52, %c0_53], %68 {strides = array<i32>} : memref<2x8x256xf32, #tpu.memory_space<vmem>>, vector<1x8x16xf32>,
      %69 = vector.extract_strided_slice %63 {offsets = [0, 18], sizes = [8, 16], strides = [1, 1]} : vector<8x288xf32> to vector<8x16xf32>
      %70 = arith.index_cast %arg1 : i32 to index
      %c0_54 = arith.constant 0 : index
      %c16 = arith.constant 16 : index
      %71 = vector.load %arg7[%70, %c0_54, %c16] : memref<2x8x256xf32, #tpu.memory_space<vmem>>, vector<1x8x16xf32>
      %72 = vector.shape_cast %71 : vector<1x8x16xf32> to vector<8x16xf32>
      %73 = vector.shape_cast %69 : vector<8x16xf32> to vector<1x8x16xf32>
      tpu.vector_store %arg7[%70, %c0_54, %c16], %73 {strides = array<i32>} : memref<2x8x256xf32, #tpu.memory_space<vmem>>, vector<1x8x16xf32>,
      %74 = vector.extract_strided_slice %63 {offsets = [0, 36], sizes = [8, 16], strides = [1, 1]} : vector<8x288xf32> to vector<8x16xf32>
      %75 = arith.index_cast %arg1 : i32 to index
      %c0_55 = arith.constant 0 : index
      %c32 = arith.constant 32 : index
      %76 = vector.load %arg7[%75, %c0_55, %c32] : memref<2x8x256xf32, #tpu.memory_space<vmem>>, vector<1x8x16xf32>
      %77 = vector.shape_cast %76 : vector<1x8x16xf32> to vector<8x16xf32>
      %78 = vector.shape_cast %74 : vector<8x16xf32> to vector<1x8x16xf32>
      tpu.vector_store %arg7[%75, %c0_55, %c32], %78 {strides = array<i32>} : memref<2x8x256xf32, #tpu.memory_space<vmem>>, vector<1x8x16xf32>,
      %79 = vector.extract_strided_slice %63 {offsets = [0, 54], sizes = [8, 16], strides = [1, 1]} : vector<8x288xf32> to vector<8x16xf32>
      %80 = arith.index_cast %arg1 : i32 to index
      %c0_56 = arith.constant 0 : index
      %c48 = arith.constant 48 : index
      %81 = vector.load %arg7[%80, %c0_56, %c48] : memref<2x8x256xf32, #tpu.memory_space<vmem>>, vector<1x8x16xf32>
      %82 = vector.shape_cast %81 : vector<1x8x16xf32> to vector<8x16xf32>
      %83 = vector.shape_cast %79 : vector<8x16xf32> to vector<1x8x16xf32>
      tpu.vector_store %arg7[%80, %c0_56, %c48], %83 {strides = array<i32>} : memref<2x8x256xf32, #tpu.memory_space<vmem>>, vector<1x8x16xf32>,
      %84 = vector.extract_strided_slice %63 {offsets = [0, 72], sizes = [8, 16], strides = [1, 1]} : vector<8x288xf32> to vector<8x16xf32>
      %85 = arith.index_cast %arg1 : i32 to index
      %c0_57 = arith.constant 0 : index
      %c64 = arith.constant 64 : index
      %86 = vector.load %arg7[%85, %c0_57, %c64] : memref<2x8x256xf32, #tpu.memory_space<vmem>>, vector<1x8x16xf32>
      %87 = vector.shape_cast %86 : vector<1x8x16xf32> to vector<8x16xf32>
      %88 = vector.shape_cast %84 : vector<8x16xf32> to vector<1x8x16xf32>
      tpu.vector_store %arg7[%85, %c0_57, %c64], %88 {strides = array<i32>} : memref<2x8x256xf32, #tpu.memory_space<vmem>>, vector<1x8x16xf32>,
      %89 = vector.extract_strided_slice %63 {offsets = [0, 90], sizes = [8, 16], strides = [1, 1]} : vector<8x288xf32> to vector<8x16xf32>
      %90 = arith.index_cast %arg1 : i32 to index
      %c0_58 = arith.constant 0 : index
      %c80 = arith.constant 80 : index
      %91 = vector.load %arg7[%90, %c0_58, %c80] : memref<2x8x256xf32, #tpu.memory_space<vmem>>, vector<1x8x16xf32>
      %92 = vector.shape_cast %91 : vector<1x8x16xf32> to vector<8x16xf32>
      %93 = vector.shape_cast %89 : vector<8x16xf32> to vector<1x8x16xf32>
      tpu.vector_store %arg7[%90, %c0_58, %c80], %93 {strides = array<i32>} : memref<2x8x256xf32, #tpu.memory_space<vmem>>, vector<1x8x16xf32>,
      %94 = vector.extract_strided_slice %63 {offsets = [0, 108], sizes = [8, 16], strides = [1, 1]} : vector<8x288xf32> to vector<8x16xf32>
      %95 = arith.index_cast %arg1 : i32 to index
      %c0_59 = arith.constant 0 : index
      %c96 = arith.constant 96 : index
      %96 = vector.load %arg7[%95, %c0_59, %c96] : memref<2x8x256xf32, #tpu.memory_space<vmem>>, vector<1x8x16xf32>
      %97 = vector.shape_cast %96 : vector<1x8x16xf32> to vector<8x16xf32>
      %98 = vector.shape_cast %94 : vector<8x16xf32> to vector<1x8x16xf32>
      tpu.vector_store %arg7[%95, %c0_59, %c96], %98 {strides = array<i32>} : memref<2x8x256xf32, #tpu.memory_space<vmem>>, vector<1x8x16xf32>,
      %99 = vector.extract_strided_slice %63 {offsets = [0, 126], sizes = [8, 16], strides = [1, 1]} : vector<8x288xf32> to vector<8x16xf32>
      %100 = arith.index_cast %arg1 : i32 to index
      %c0_60 = arith.constant 0 : index
      %c112 = arith.constant 112 : index
      %101 = vector.load %arg7[%100, %c0_60, %c112] : memref<2x8x256xf32, #tpu.memory_space<vmem>>, vector<1x8x16xf32>
      %102 = vector.shape_cast %101 : vector<1x8x16xf32> to vector<8x16xf32>
      %103 = vector.shape_cast %99 : vector<8x16xf32> to vector<1x8x16xf32>
      tpu.vector_store %arg7[%100, %c0_60, %c112], %103 {strides = array<i32>} : memref<2x8x256xf32, #tpu.memory_space<vmem>>, vector<1x8x16xf32>,
      %104 = vector.extract_strided_slice %63 {offsets = [0, 144], sizes = [8, 16], strides = [1, 1]} : vector<8x288xf32> to vector<8x16xf32>
      %105 = arith.index_cast %arg1 : i32 to index
      %c0_61 = arith.constant 0 : index
      %c128 = arith.constant 128 : index
      %106 = vector.load %arg7[%105, %c0_61, %c128] : memref<2x8x256xf32, #tpu.memory_space<vmem>>, vector<1x8x16xf32>
      %107 = vector.shape_cast %106 : vector<1x8x16xf32> to vector<8x16xf32>
      %108 = vector.shape_cast %104 : vector<8x16xf32> to vector<1x8x16xf32>
      tpu.vector_store %arg7[%105, %c0_61, %c128], %108 {strides = array<i32>} : memref<2x8x256xf32, #tpu.memory_space<vmem>>, vector<1x8x16xf32>,
      %109 = vector.extract_strided_slice %63 {offsets = [0, 162], sizes = [8, 16], strides = [1, 1]} : vector<8x288xf32> to vector<8x16xf32>
      %110 = arith.index_cast %arg1 : i32 to index
      %c0_62 = arith.constant 0 : index
      %c144 = arith.constant 144 : index
      %111 = vector.load %arg7[%110, %c0_62, %c144] : memref<2x8x256xf32, #tpu.memory_space<vmem>>, vector<1x8x16xf32>
      %112 = vector.shape_cast %111 : vector<1x8x16xf32> to vector<8x16xf32>
      %113 = vector.shape_cast %109 : vector<8x16xf32> to vector<1x8x16xf32>
      tpu.vector_store %arg7[%110, %c0_62, %c144], %113 {strides = array<i32>} : memref<2x8x256xf32, #tpu.memory_space<vmem>>, vector<1x8x16xf32>,
      %114 = vector.extract_strided_slice %63 {offsets = [0, 180], sizes = [8, 16], strides = [1, 1]} : vector<8x288xf32> to vector<8x16xf32>
      %115 = arith.index_cast %arg1 : i32 to index
      %c0_63 = arith.constant 0 : index
      %c160 = arith.constant 160 : index
      %116 = vector.load %arg7[%115, %c0_63, %c160] : memref<2x8x256xf32, #tpu.memory_space<vmem>>, vector<1x8x16xf32>
      %117 = vector.shape_cast %116 : vector<1x8x16xf32> to vector<8x16xf32>
      %118 = vector.shape_cast %114 : vector<8x16xf32> to vector<1x8x16xf32>
      tpu.vector_store %arg7[%115, %c0_63, %c160], %118 {strides = array<i32>} : memref<2x8x256xf32, #tpu.memory_space<vmem>>, vector<1x8x16xf32>,
      %119 = vector.extract_strided_slice %63 {offsets = [0, 198], sizes = [8, 16], strides = [1, 1]} : vector<8x288xf32> to vector<8x16xf32>
      %120 = arith.index_cast %arg1 : i32 to index
      %c0_64 = arith.constant 0 : index
      %c176 = arith.constant 176 : index
      %121 = vector.load %arg7[%120, %c0_64, %c176] : memref<2x8x256xf32, #tpu.memory_space<vmem>>, vector<1x8x16xf32>
      %122 = vector.shape_cast %121 : vector<1x8x16xf32> to vector<8x16xf32>
      %123 = vector.shape_cast %119 : vector<8x16xf32> to vector<1x8x16xf32>
      tpu.vector_store %arg7[%120, %c0_64, %c176], %123 {strides = array<i32>} : memref<2x8x256xf32, #tpu.memory_space<vmem>>, vector<1x8x16xf32>,
      %124 = vector.extract_strided_slice %63 {offsets = [0, 216], sizes = [8, 16], strides = [1, 1]} : vector<8x288xf32> to vector<8x16xf32>
      %125 = arith.index_cast %arg1 : i32 to index
      %c0_65 = arith.constant 0 : index
      %c192 = arith.constant 192 : index
      %126 = vector.load %arg7[%125, %c0_65, %c192] : memref<2x8x256xf32, #tpu.memory_space<vmem>>, vector<1x8x16xf32>
      %127 = vector.shape_cast %126 : vector<1x8x16xf32> to vector<8x16xf32>
      %128 = vector.shape_cast %124 : vector<8x16xf32> to vector<1x8x16xf32>
      tpu.vector_store %arg7[%125, %c0_65, %c192], %128 {strides = array<i32>} : memref<2x8x256xf32, #tpu.memory_space<vmem>>, vector<1x8x16xf32>,
      %129 = vector.extract_strided_slice %63 {offsets = [0, 234], sizes = [8, 16], strides = [1, 1]} : vector<8x288xf32> to vector<8x16xf32>
      %130 = arith.index_cast %arg1 : i32 to index
      %c0_66 = arith.constant 0 : index
      %c208 = arith.constant 208 : index
      %131 = vector.load %arg7[%130, %c0_66, %c208] : memref<2x8x256xf32, #tpu.memory_space<vmem>>, vector<1x8x16xf32>
      %132 = vector.shape_cast %131 : vector<1x8x16xf32> to vector<8x16xf32>
      %133 = vector.shape_cast %129 : vector<8x16xf32> to vector<1x8x16xf32>
      tpu.vector_store %arg7[%130, %c0_66, %c208], %133 {strides = array<i32>} : memref<2x8x256xf32, #tpu.memory_space<vmem>>, vector<1x8x16xf32>,
      %134 = vector.extract_strided_slice %63 {offsets = [0, 252], sizes = [8, 16], strides = [1, 1]} : vector<8x288xf32> to vector<8x16xf32>
      %135 = arith.index_cast %arg1 : i32 to index
      %c0_67 = arith.constant 0 : index
      %c224 = arith.constant 224 : index
      %136 = vector.load %arg7[%135, %c0_67, %c224] : memref<2x8x256xf32, #tpu.memory_space<vmem>>, vector<1x8x16xf32>
      %137 = vector.shape_cast %136 : vector<1x8x16xf32> to vector<8x16xf32>
      %138 = vector.shape_cast %134 : vector<8x16xf32> to vector<1x8x16xf32>
      tpu.vector_store %arg7[%135, %c0_67, %c224], %138 {strides = array<i32>} : memref<2x8x256xf32, #tpu.memory_space<vmem>>, vector<1x8x16xf32>,
      %139 = vector.extract_strided_slice %63 {offsets = [0, 270], sizes = [8, 16], strides = [1, 1]} : vector<8x288xf32> to vector<8x16xf32>
      %140 = arith.index_cast %arg1 : i32 to index
      %c0_68 = arith.constant 0 : index
      %c240 = arith.constant 240 : index
      %141 = vector.load %arg7[%140, %c0_68, %c240] : memref<2x8x256xf32, #tpu.memory_space<vmem>>, vector<1x8x16xf32>
      %142 = vector.shape_cast %141 : vector<1x8x16xf32> to vector<8x16xf32>
      %143 = vector.shape_cast %139 : vector<8x16xf32> to vector<1x8x16xf32>
      tpu.vector_store %arg7[%140, %c0_68, %c240], %143 {strides = array<i32>} : memref<2x8x256xf32, #tpu.memory_space<vmem>>, vector<1x8x16xf32>,
      %144 = arith.index_cast %arg1 : i32 to index
      %c0_69 = arith.constant 0 : index
      %c0_70 = arith.constant 0 : index
      %145 = vector.load %arg7[%144, %c0_69, %c0_70] : memref<2x8x256xf32, #tpu.memory_space<vmem>>, vector<1x8x256xf32>
      %146 = vector.shape_cast %145 : vector<1x8x256xf32> to vector<8x256xf32>
      %c0_71 = arith.constant 0 : index
      %c0_72 = arith.constant 0 : index
      %147 = vector.load %arg8[%c0_71, %c0_72] : memref<8x1xf32, #tpu.memory_space<vmem>>, vector<8x1xf32>
      %cst_73 = arith.constant dense<0.000000e+00> : vector<8xf32>
      %148 = vector.multi_reduction <add>, %146, %cst_73 [1] : vector<8x256xf32> to vector<8xf32>
      %149 = vector.shape_cast %148 : vector<8xf32> to vector<8x1xf32>
      %150 = arith.addf %147, %149 : vector<8x1xf32>
      %c0_74 = arith.constant 0 : index
      %c0_75 = arith.constant 0 : index
      %151 = vector.load %arg8[%c0_74, %c0_75] : memref<8x1xf32, #tpu.memory_space<vmem>>, vector<8x1xf32>
      tpu.vector_store %arg8[%c0_74, %c0_75], %150 {strides = array<i32>} : memref<8x1xf32, #tpu.memory_space<vmem>>, vector<8x1xf32>,
      %c0_76 = arith.constant 0 : index
      %c0_77 = arith.constant 0 : index
      %152 = vector.load %arg9[%c0_76, %c0_77] : memref<8x1xf32, #tpu.memory_space<vmem>>, vector<8x1xf32>
      %153 = arith.mulf %146, %146 : vector<8x256xf32>
      %cst_78 = arith.constant dense<0.000000e+00> : vector<8xf32>
      %154 = vector.multi_reduction <add>, %153, %cst_78 [1] : vector<8x256xf32> to vector<8xf32>
      %155 = vector.shape_cast %154 : vector<8xf32> to vector<8x1xf32>
      %156 = arith.addf %152, %155 : vector<8x1xf32>
      %c0_79 = arith.constant 0 : index
      %c0_80 = arith.constant 0 : index
      %157 = vector.load %arg9[%c0_79, %c0_80] : memref<8x1xf32, #tpu.memory_space<vmem>>, vector<8x1xf32>
      tpu.vector_store %arg9[%c0_79, %c0_80], %156 {strides = array<i32>} : memref<8x1xf32, #tpu.memory_space<vmem>>, vector<8x1xf32>,
    } else {
    }
    %c1_i32 = arith.constant 1 : i32
    %3 = arith.cmpi eq, %arg0, %c1_i32 : i32
    %4 = arith.extui %3 : i1 to i32
    %c0_i32_1 = arith.constant 0 : i32
    %5 = arith.cmpi ne, %4, %c0_i32_1 : i32
    scf.if %5 {
      %c0 = arith.constant 0 : index
      %c0_2 = arith.constant 0 : index
      %6 = vector.load %arg8[%c0, %c0_2] : memref<8x1xf32, #tpu.memory_space<vmem>>, vector<8x1xf32>
      %cst = arith.constant 0.001953125 : f32
      %7 = vector.broadcast %cst : f32 to vector<8x1xf32>
      %8 = arith.mulf %6, %7 : vector<8x1xf32>
      %c0_3 = arith.constant 0 : index
      %c0_4 = arith.constant 0 : index
      %9 = vector.load %arg9[%c0_3, %c0_4] : memref<8x1xf32, #tpu.memory_space<vmem>>, vector<8x1xf32>
      %cst_5 = arith.constant 0.001953125 : f32
      %10 = vector.broadcast %cst_5 : f32 to vector<8x1xf32>
      %11 = arith.mulf %9, %10 : vector<8x1xf32>
      %12 = arith.mulf %8, %8 : vector<8x1xf32>
      %13 = arith.subf %11, %12 : vector<8x1xf32>
      %c0_6 = arith.constant 0 : index
      %c0_7 = arith.constant 0 : index
      %14 = vector.load %arg4[%c0_6, %c0_7] : memref<8x1xf32, #tpu.memory_space<vmem>>, vector<8x1xf32>
      %cst_8 = arith.constant 9.99999974E-6 : f32
      %15 = vector.broadcast %cst_8 : f32 to vector<8x1xf32>
      %16 = arith.addf %13, %15 : vector<8x1xf32>
      %17 = math.rsqrt %16 : vector<8x1xf32>
      %18 = arith.mulf %14, %17 : vector<8x1xf32>
      %c0_9 = arith.constant 0 : index
      %c0_10 = arith.constant 0 : index
      %19 = vector.load %arg5[%c0_9, %c0_10] : memref<8x1xf32, #tpu.memory_space<vmem>>, vector<8x1xf32>
      %20 = arith.mulf %8, %18 : vector<8x1xf32>
      %21 = arith.subf %19, %20 : vector<8x1xf32>
      %22 = arith.index_cast %arg1 : i32 to index
      %c0_11 = arith.constant 0 : index
      %c0_12 = arith.constant 0 : index
      %23 = vector.load %arg7[%22, %c0_11, %c0_12] : memref<2x8x256xf32, #tpu.memory_space<vmem>>, vector<1x8x256xf32>
      %24 = vector.shape_cast %23 : vector<1x8x256xf32> to vector<8x256xf32>
      %25 = vector.broadcast %18 : vector<8x1xf32> to vector<8x256xf32>
      %26 = arith.mulf %24, %25 : vector<8x256xf32>
      %27 = vector.broadcast %21 : vector<8x1xf32> to vector<8x256xf32>
      %28 = arith.addf %26, %27 : vector<8x256xf32>
      %cst_13 = arith.constant 0.000000e+00 : f32
      %29 = vector.broadcast %cst_13 : f32 to vector<8x256xf32>
      %30 = arith.maximumf %28, %29 : vector<8x256xf32>
      %c0_14 = arith.constant 0 : index
      %c0_15 = arith.constant 0 : index
      %c0_16 = arith.constant 0 : index
      %31 = vector.load %arg6[%c0_14, %c0_15, %c0_16] : memref<1x8x256xf32, #tpu.memory_space<vmem>>, vector<1x8x256xf32>
      %32 = vector.shape_cast %31 : vector<1x8x256xf32> to vector<8x256xf32>
      %33 = vector.shape_cast %30 : vector<8x256xf32> to vector<1x8x256xf32>
      tpu.vector_store %arg6[%c0_14, %c0_15, %c0_16], %33 {strides = array<i32>} : memref<1x8x256xf32, #tpu.memory_space<vmem>>, vector<1x8x256xf32>,
    } else {
    }
    return
  }
  func.func @transform_0(%arg0: i32, %arg1: i32) -> (i32, i32, i32) {
    %c1_i32 = arith.constant 1 : i32
    %0 = arith.subi %c1_i32, %arg0 : i32
    %1 = arith.muli %arg1, %0 : i32
    %c1_i32_0 = arith.constant 1 : i32
    %2 = arith.muli %c1_i32_0, %arg0 : i32
    %3 = arith.addi %1, %2 : i32
    %c0_i32 = arith.constant 0 : i32
    %c0_i32_1 = arith.constant 0 : i32
    %c0_i32_2 = arith.constant 0 : i32
    return %3, %c0_i32, %c0_i32_1 : i32, i32, i32
  }
  func.func @transform_1(%arg0: i32, %arg1: i32) -> (i32, i32, i32) {
    %c0_i32 = arith.constant 0 : i32
    %c0_i32_0 = arith.constant 0 : i32
    %c0_i32_1 = arith.constant 0 : i32
    %c0_i32_2 = arith.constant 0 : i32
    return %c0_i32, %c0_i32_0, %c0_i32_1 : i32, i32, i32
  }
  func.func @transform_2(%arg0: i32, %arg1: i32) -> (i32, i32) {
    %c0_i32 = arith.constant 0 : i32
    %c0_i32_0 = arith.constant 0 : i32
    %c0_i32_1 = arith.constant 0 : i32
    return %c0_i32, %c0_i32_0 : i32, i32
  }
  func.func @transform_3(%arg0: i32, %arg1: i32) -> (i32, i32) {
    %c0_i32 = arith.constant 0 : i32
    %c0_i32_0 = arith.constant 0 : i32
    %c0_i32_1 = arith.constant 0 : i32
    return %c0_i32, %c0_i32_0 : i32, i32
  }
  func.func @transform_4(%arg0: i32, %arg1: i32) -> (i32, i32, i32) {
    %0 = arith.muli %arg1, %arg0 : i32
    %c0_i32 = arith.constant 0 : i32
    %c0_i32_0 = arith.constant 0 : i32
    %c0_i32_1 = arith.constant 0 : i32
    return %0, %c0_i32, %c0_i32_0 : i32, i32, i32
  }
}

</mosaic_0001>

<bundles_post_ra>
// kernel: tpu_custom_call.1
= control target key start
LH: loop header
LB: loop body
LE: loop exit
PB: predicated region body
PF: predicated region fallthrough
CT: control target
= control target key end

     0   :  { %s2733_s0 = inlined_call_operand.vmem [shape: f32[2,4,342], index: 0, kind: input, shape index: {}]   ;;  %s2734_s1 = inlined_call_operand.vmem [shape: f32[9,8,4], index: 1, kind: input, shape index: {}]   ;;  %s2735_s2 = inlined_call_operand.vmem [shape: f32[8,1], index: 2, kind: input, shape index: {}]   ;;  %s2736_s3 = inlined_call_operand.vmem [shape: f32[8,1], index: 3, kind: input, shape index: {}]   ;;  %s2737_s4 = inlined_call_operand.hbm [shape: f32[2,8,256], index: 4, kind: output, shape index: {}]  }
   0x1   :  { %2739 = sst [smem:[#allocation8_spill]] %s2733_s0 }
   0x2   :  { %9 = vsyncpa [#allocation6], 0 }
   0x3   :  { %11 = vsyncpa [#allocation6 + $0x1], 0  ;;  %s2391_s15 = smov 0   ;;  %s2393_s16 = smov 0  }
   0x4   :  { %s2395_s17 = smov 0   ;;  %s2397_s18 = smov 0  }
   0x5   :  { %s2399_s19 = smov 0   ;;  %s2401_s20 = smov 0  }
   0x6   :  { %s2403_s21 = smov 0   ;;  %s2405_s22 = smov 0  }
   0x7 LB: > { %s1975_s23 = sadd.s32 4294967295, %s2339_s22   ;;  %s1976_s24 = sadd.s32 4294967294, %s2339_s22   ;;  %s2339_s22 = sphi %s2405_s22, %s17_s22   ;;  %s2335_s21 = sphi %s2403_s21, %s2750_s21   ;;  %s2331_s20 = sphi %s2401_s20, %s2749_s20   ;;  %s2327_s19 = sphi %s2399_s19, %s2748_s19   ;;  %s2323_s18 = sphi %s2397_s18, %s2747_s18   ;;  %s2319_s17 = sphi %s2395_s17, %s2746_s17   ;;  %s2315_s16 = sphi %s2393_s16, %s2745_s16   ;;  %s2311_s15 = sphi %s2391_s15, %s2744_s15  }
   0x8   : > { %s26_s25 = sadd.s32 1, %s2331_s20  ;;  %s29_s26 = sadd.s32 1, %s2335_s21 }
   0x9   : > { %p27_p0 = scmp.ge.s32.totalorder %s26_s25, 2  ;;  %s128_s27 = smul.u32 %s2331_s20, %s2335_s21 }
   0xa   : > { %p143_p1 = scmp.ne.s32.totalorder %s2319_s17, %s2315_s16  ;;  %p144_p2 = scmp.eq.s32.totalorder %s1975_s23, 3 }
   0xb   : > { %s2752_s25 = smov (%p27_p0, %s26_s25), 0  ;;  %s2754_s26 = smov (!%p27_p0, %s29_s26), %s2335_s21 }
   0xc   : > { %p149_p3 = scmp.ne.s32.totalorder %s2315_s16, %s2311_s15  ;;  %p31_p4 = scmp.ge.s32.totalorder %s2754_s26, 2 }
   0xd   : > { %p150_p5 = scmp.eq.s32.totalorder %s1976_s24, 3  ;;  %p2444_p6 = por %p144_p2, %p143_p1 }
   0xe   : > { %p1979_p7 = scmp.ge.s32.totalorder %s2339_s22, 1  ;;  %s2756_s26 = smov (%p31_p4, %s2754_s26), 0 }
   0xf   : > { %p2451_p8 = por %p150_p5, %p149_p3  ;;  %p191_p9 = scmp.lt.s32.totalorder %s2339_s22, 5 }
  0x10   : > { %s129_s30 = smul.u32 %s2756_s26, %s2752_s25  ;;  %s133_s6 = sadd.s32 1, %s2319_s17 }
  0x11   : > { %p192_p10 = pnand %p1979_p7, %p191_p9 }
  0x12   : > { %s130_s5 = ssub.s32 %s128_s27, %s129_s30  ;;  %s2738_s8 = sand.u32 (!%p192_p10), 1, %s2315_s16  }
  0x13   : > { %p131_p11 = scmp.eq.s32.totalorder %s130_s5, 0  ;;  %195 = sbr.rel (%p192_p10) target bundleno = 932 (0x3a4), region = 36 }
  0x14   : > { %s220_s9 = ssub.s32 (!%p192_p10), 1, %s2327_s19  ;;  %s1980_s10 = sshll.u32 (!%p192_p10), %s2738_s8, 4 }
  0x15   : > { %s2460_s7 = scalar_select %p131_p11, %s2319_s17, %s133_s6  }
  0x16   : > { %s221_s11 = smul.u32 (!%p192_p10), %s2323_s18, %s220_s9  ;;  %s2742_s0 = sld [smem:[#allocation8_spill]] (!%p192_p10) }
  0x17   : > { %s2473_s27 = scalar_lea.vmem (!%p192_p10), [#allocation5], %s1980_s10  ;;  %p1982_p13 = scmp.ne.s32.totalorder (!%p192_p10), %s2327_s19, 0 }
  0x18   : > { %s222_s12 = sadd.s32 (!%p192_p10), %s2327_s19, %s221_s11 }
  0x19   : > { %p223_p12 = scmp.lt.s32.totalorder (!%p192_p10), %s222_s12, 1 }
  0x1a   : > { %235 = sbr.rel (%p1982_p13) target bundleno = 743 (0x2e7), region = 40  ;;  %p1983_p0 = scmp.ne.s32.totalorder (!%p1982_p13), %s2323_s18, 0 }
  0x1b   : > { %s2758_s12 = smov (!%p223_p12, %s222_s12), 1 }
  0x1c   : > { %s2145_s13 = smul.u32 12, %s2758_s12 }
  0x1e   : > { %s2471_s24 = scalar_lea.vmem %s2742_s0, %s2145_s13 }
  0x21   : > { %239 = sbr.rel (%p1983_p0) target bundleno = 40 (0x28), region = 44  ;;  %vm240_vm0 = vcmask (!%p1983_p0), 7168   ;;  %v2341_v0 = vmov (!%p1983_p0), 0.0  }
  0x22   : > { %241 = vst.msk [vmem:[#allocation3] sm:$0xff] (!%p1983_p0), %vm240_vm0, %v2341_v0  ;;  %242 = vst.msk [vmem:[#allocation4] sm:$0xff] (!%p1983_p0), %vm240_vm0, %v2341_v0 }
  0x28 PF: > { %v2478_v1 = vld [vmem:[%s2471_s24] sm:$0xff]  ;;  %s2342_s30 = smov 127   ;;  %v2343_v3 = vmov 0.0   ;;  %v245_v4 = vld [vmem:[%s2471_s24 + $0x8] sm:$0xf]  ;;  %s2344_s5 = smov 126  }
  0x29   : > { %251 = vrot.lane.b32.xlu1 %v2478_v1, %s2342_s30  ;;  %v2483_v2 = vcombine.high %v2478_v1, %v2478_v1  ;;  %2068 = vmatprep.subr.mxu1 %v2343_v3  ;;  %vm2345_vm1 = vmmov 0   ;;  %v565_v5 = vld [vmem:[%s2471_s24 + $0x8] sm:$0xf]  ;;  %s2346_s6 = smov 110   ;;  %s2347_s9 = smov 109   ;;  %vm264_vm2 = vcmask 1043456  }
  0x2a   : > { %335 = vmatprep.mubr.f32.mxu0 %v2343_v3  ;;  %2070 = vmatprep.mubr.msk.f32.mxu1 %vm2345_vm1, %v2343_v3  ;;  %v734_v6 = vld [vmem:[%s2471_s24 + $0x8] sm:$0xf]  ;;  %s2348_s10 = smov 108   ;;  %s2349_s11 = smov 92   ;;  %vm257_vm3 = vcmask 1039360   ;;  %vm260_vm4 = vcmask 31744  }
  0x2b   : > { %253 = vrot.lane.b32.xlu0 %v2483_v2, %s2342_s30  ;;  %v903_v7 = vld [vmem:[%s2471_s24 + $0x8] sm:$0xf]  ;;  %s2350_s12 = smov 91   ;;  %s2351_s13 = smov 90   ;;  %vm575_vm5 = vcmask 1031168   ;;  %v243_v22 = vld [vmem:[%s2734_s1] sm:$0xff] }
  0x2c   : > { %v1072_v8 = vld [vmem:[%s2471_s24 + $0x8] sm:$0xf]  ;;  %vm744_vm6 = vcmask 900096   ;;  %v1995_v29 = vld [vmem:[%s2734_s1 + $0x10] sm:$0xff]  ;;  %vm913_vm7 = vcmask 891904   ;;  %v2001_v35 = vld [vmem:[%s2734_s1 + $0x18] sm:$0xff] }
  0x2d   : > { %571 = vrot.lane.b32.xlu1 %v2483_v2, %s2344_s5  ;;  %v1241_v9 = vld [vmem:[%s2471_s24 + $0x8] sm:$0xf]  ;;  %vm1082_vm8 = vcmask 883712   ;;  %v2007_v41 = vld [vmem:[%s2734_s1 + $0x20] sm:$0xff]  ;;  %vm1251_vm9 = vcmask 752640   ;;  %vm1420_vm10 = vcmask 744448  }
  0x2e   : > { %v1410_v10 = vld [vmem:[%s2471_s24 + $0x8] sm:$0xf]  ;;  %v2019_v52 = vld [vmem:[%s2734_s1 + $0x30] sm:$0xff]  ;;  %vm1589_vm11 = vcmask 736256   ;;  %v2025_v58 = vld [vmem:[%s2734_s1 + $0x38] sm:$0xff]  ;;  %vm1748_vm12 = vcmask 130048  }
  0x2f   : > { %255 = vrot.lane.b32.xlu0 %v245_v4, %s2342_s30  ;;  %v1579_v11 = vld [vmem:[%s2471_s24 + $0x8] sm:$0xf]  ;;  %v2031_v60 = vld [vmem:[%s2734_s1 + $0x40] sm:$0xff]  ;;  %s2047_s24 = sshll.u32 %s2323_s18, 4  ;;  %s2352_s30 = smov 100   ;;  %vm1754_vm13 = vcmask 261248  }
  0x30   : > { %v1984_v15 = vld [vmem:[%s2734_s1 + $0x8] sm:$0xff]  ;;  %s2356_s14 = smov 122   ;;  %s2357_s23 = smov 120   ;;  %vm1759_vm14 = vcmask 392448   ;;  %vm1764_vm15 = vcmask 523648   ;;  %vm1769_vm0 = vcmask 654848  }
  0x31   : > { %569 = vrot.lane.b32.xlu1 %v2478_v1, %s2344_s5  ;;  %v2013_v47 = vld [vmem:[%s2734_s1 + $0x28] sm:$0xff]  ;;  %s2360_s8 = smov 116   ;;  %s2361_s0 = smov 104  }
  0x33   : > { %573 = vrot.lane.b32.xlu0 %v565_v5, %s2344_s5 }
  0x35   : > { %742 = vrot.lane.b32.xlu1 %v734_v6, %s2346_s6 }
  0x37   : > { %740 = vrot.lane.b32.xlu0 %v2483_v2, %s2346_s6 }
  0x39   : > { %909 = vrot.lane.b32.xlu1 %v2483_v2, %s2347_s9 }
  0x3b   : > { %738 = vrot.lane.b32.xlu0 %v2478_v1, %s2346_s6 }
  0x3d   : > { %907 = vrot.lane.b32.xlu1 %v2478_v1, %s2347_s9 }
  0x3f   : > { %911 = vrot.lane.b32.xlu0 %v903_v7, %s2347_s9  ;;  %s2641_s9 = scalar_lea.vmem [#allocation2], %s2047_s24  ;;  %s2359_s24 = smov 106  }
  0x41   : > { %1080 = vrot.lane.b32.xlu1 %v1072_v8, %s2348_s10 }
  0x43   : > { %1078 = vrot.lane.b32.xlu0 %v2483_v2, %s2348_s10 }
  0x45   : > { %1247 = vrot.lane.b32.xlu1 %v2483_v2, %s2349_s11 }
  0x47   : > { %1076 = vrot.lane.b32.xlu0 %v2478_v1, %s2348_s10 }
  0x49   : > { %1245 = vrot.lane.b32.xlu1 %v2478_v1, %s2349_s11 }
  0x4b   : > { %1249 = vrot.lane.b32.xlu0 %v1241_v9, %s2349_s11  ;;  %s2353_s11 = smov 114  }
  0x4d   : > { %1418 = vrot.lane.b32.xlu1 %v1410_v10, %s2350_s12 }
  0x4f   : > { %1416 = vrot.lane.b32.xlu0 %v2483_v2, %s2350_s12 }
  0x51   : > { %1585 = vrot.lane.b32.xlu1 %v2483_v2, %s2351_s13 }
  0x53   : > { %1414 = vrot.lane.b32.xlu0 %v2478_v1, %s2350_s12  ;;  %s2354_s12 = smov 124  }
  0x55   : > { %1583 = vrot.lane.b32.xlu1 %v2478_v1, %s2351_s13 }
  0x57   : > { %1587 = vrot.lane.b32.xlu0 %v1579_v11, %s2351_s13  ;;  %s2355_s13 = smov 112  }
  0x9b   : > { %v252_v12 = vpop.permute.xlu1 %251 }
  0x9d   : > { %v254_v13 = vpop.permute.xlu0 %253 }
  0x9e   : > { %v258_v18 = vsel %vm257_vm3, %v252_v12, %v254_v13 }
  0x9f   : > { %v572_v14 = vpop.permute.xlu1 %571 }
  0xa1   : > { %v256_v16 = vpop.permute.xlu0 %255 }
  0xa2   : > { %2069 = vmatpush3.msk.msra.mxu1 %vm264_vm2, %v256_v16  ;;  %v259_v17 = vsel %vm257_vm3, %v254_v13, %v256_v16  ;;  %vm1820_vm3 = vcmask 818176  }
  0xa3   : > { %1985 = vmatprep.subr.msk.mxu0 %vm264_vm2, %v259_v17  ;;  %2071 = vmatmul.mubr.msk.f32.vlgmr.msra.gmra.mrb[0].mxu1 %vm260_vm4, %v1984_v15  ;;  %v570_v19 = vpop.permute.xlu1 %569 }
  0xa4   : > { %2073 = vmatprep.subr.mxu1 %v2343_v3  ;;  %1986 = vmatpush1.msk.msra.mxu0 %vm264_vm2, %v258_v18  ;;  %v576_v25 = vsel %vm575_vm5, %v570_v19, %v572_v14 }
  0xa5   : > { %2074 = vmatpush3.msk.msra.mxu1 %vm264_vm2, %v245_v4  ;;  %1987 = vmatmul.mubr.msk.f32.vlgmr.msra.gmra.mrb[0].mxu0 %vm260_vm4, %v1984_v15  ;;  %v574_v20 = vpop.permute.xlu0 %573 }
  0xa6   : > { %1990 = vmatprep.subr.msk.mxu0 %vm264_vm2, %v2483_v2  ;;  %v577_v21 = vsel %vm575_vm5, %v572_v14, %v574_v20  ;;  %2075 = vmatprep.mubr.msk.f32.mxu1 %vm2345_vm1, %v2343_v3  ;;  %vm1789_vm5 = vcmask 1048448  }
  0xa7   : > { %1991 = vmatpush1.msk.msra.mxu0 %vm264_vm2, %v2478_v1  ;;  %2078 = vmatprep.subr.mxu1 %v2343_v3  ;;  %v743_v24 = vpop.permute.xlu1 %742 }
  0xa8   : > { %1996 = vmatprep.subr.msk.mxu0 %vm264_vm2, %v577_v21  ;;  %485 = vmatprep.mubr.f32.mxu0 %v2343_v3 }
  0xa9   : > { %v741_v23 = vpop.permute.xlu0 %740 }
  0xaa   : > { %v746_v26 = vsel %vm744_vm6, %v741_v23, %v743_v24 }
  0xab   : > { %2076 = vmatmul.mubr.msk.f32.vlgmr.msra.gmra.mrb[0].mxu1 %vm260_vm4, %v243_v22  ;;  %v910_v28 = vpop.permute.xlu1 %909 }
  0xac   : > { %2079 = vmatpush3.msk.msra.mxu1 %vm264_vm2, %v574_v20  ;;  %2080 = vmatprep.mubr.msk.f32.mxu1 %vm2345_vm1, %v2343_v3 }
  0xad   : > { %1992 = vmatmul.mubr.msk.f32.vlgmr.msra.gmra.mrb[0].mxu0 %vm260_vm4, %v243_v22  ;;  %v739_v27 = vpop.permute.xlu0 %738  ;;  %2083 = vmatprep.subr.mxu1 %v2343_v3 }
  0xae   : > { %1997 = vmatpush1.msk.msra.mxu0 %vm264_vm2, %v576_v25  ;;  %651 = vmatprep.mubr.f32.mxu0 %v2343_v3  ;;  %v745_v31 = vsel %vm744_vm6, %v739_v27, %v741_v23  ;;  %vm1835_vm6 = vcmask 7168  }
  0xaf   : > { %2002 = vmatprep.subr.msk.mxu0 %vm264_vm2, %v746_v26  ;;  %v908_v33 = vpop.permute.xlu1 %907  ;;  %v1830_v26 = vld [vmem:[#allocation3] sm:$0xff] }
  0xb0   : > { %v914_v37 = vsel %vm913_vm7, %v908_v33, %v910_v28 }
  0xb1   : > { %v912_v30 = vpop.permute.xlu0 %911 }
  0xb2   : > { %v915_v32 = vsel %vm913_vm7, %v910_v28, %v912_v30  ;;  %v1837_v28 = vld [vmem:[#allocation4] sm:$0xff] }
  0xb3   : > { %2081 = vmatmul.mubr.msk.f32.vlgmr.msra.gmra.mrb[0].mxu1 %vm260_vm4, %v1995_v29  ;;  %v1081_v36 = vpop.permute.xlu1 %1080 }
  0xb4   : > { %2084 = vmatpush3.msk.msra.mxu1 %vm264_vm2, %v743_v24  ;;  %2085 = vmatprep.mubr.msk.f32.mxu1 %vm2345_vm1, %v2343_v3 }
  0xb5   : > { %1998 = vmatmul.mubr.msk.f32.vlgmr.msra.gmra.mrb[0].mxu0 %vm260_vm4, %v1995_v29  ;;  %2088 = vmatprep.subr.mxu1 %v2343_v3  ;;  %v1079_v34 = vpop.permute.xlu0 %1078 }
  0xb6   : > { %2003 = vmatpush1.msk.msra.mxu0 %vm264_vm2, %v745_v31  ;;  %820 = vmatprep.mubr.f32.mxu0 %v2343_v3  ;;  %v1084_v38 = vsel %vm1082_vm8, %v1079_v34, %v1081_v36 }
  0xb7   : > { %2008 = vmatprep.subr.msk.mxu0 %vm264_vm2, %v915_v32  ;;  %v1248_v40 = vpop.permute.xlu1 %1247 }
  0xb9   : > { %v1077_v39 = vpop.permute.xlu0 %1076 }
  0xba   : > { %v1083_v43 = vsel %vm1082_vm8, %v1077_v39, %v1079_v34 }
  0xbb   : > { %2086 = vmatmul.mubr.msk.f32.vlgmr.msra.gmra.mrb[0].mxu1 %vm260_vm4, %v2001_v35  ;;  %v1246_v45 = vpop.permute.xlu1 %1245 }
  0xbc   : > { %2089 = vmatpush3.msk.msra.mxu1 %vm264_vm2, %v912_v30  ;;  %2090 = vmatprep.mubr.msk.f32.mxu1 %vm2345_vm1, %v2343_v3  ;;  %v1252_v49 = vsel %vm1251_vm9, %v1246_v45, %v1248_v40 }
  0xbd   : > { %2004 = vmatmul.mubr.msk.f32.vlgmr.msra.gmra.mrb[0].mxu0 %vm260_vm4, %v2001_v35  ;;  %2093 = vmatprep.subr.mxu1 %v2343_v3  ;;  %v1250_v42 = vpop.permute.xlu0 %1249 }
  0xbe   : > { %2009 = vmatpush1.msk.msra.mxu0 %vm264_vm2, %v914_v37  ;;  %989 = vmatprep.mubr.f32.mxu0 %v2343_v3  ;;  %v1253_v44 = vsel %vm1251_vm9, %v1248_v40, %v1250_v42 }
  0xbf   : > { %2014 = vmatprep.subr.msk.mxu0 %vm264_vm2, %v1084_v38  ;;  %v1419_v48 = vpop.permute.xlu1 %1418 }
  0xc1   : > { %v1417_v46 = vpop.permute.xlu0 %1416 }
  0xc2   : > { %v1422_v50 = vsel %vm1420_vm10, %v1417_v46, %v1419_v48 }
  0xc3   : > { %2091 = vmatmul.mubr.msk.f32.vlgmr.msra.gmra.mrb[0].mxu1 %vm260_vm4, %v2007_v41  ;;  %v1586_v54 = vpop.permute.xlu1 %1585 }
  0xc4   : > { %2094 = vmatpush3.msk.msra.mxu1 %vm264_vm2, %v1081_v36  ;;  %2095 = vmatprep.mubr.msk.f32.mxu1 %vm2345_vm1, %v2343_v3 }
  0xc5   : > { %2010 = vmatmul.mubr.msk.f32.vlgmr.msra.gmra.mrb[0].mxu0 %vm260_vm4, %v2007_v41  ;;  %2098 = vmatprep.subr.mxu1 %v2343_v3  ;;  %v1415_v51 = vpop.permute.xlu0 %1414 }
  0xc6   : > { %2015 = vmatpush1.msk.msra.mxu0 %vm264_vm2, %v1083_v43  ;;  %1158 = vmatprep.mubr.f32.mxu0 %v2343_v3  ;;  %v1421_v55 = vsel %vm1420_vm10, %v1415_v51, %v1417_v46 }
  0xc7   : > { %2020 = vmatprep.subr.msk.mxu0 %vm264_vm2, %v1253_v44  ;;  %v1584_v57 = vpop.permute.xlu1 %1583 }
  0xc8   : > { %v1590_v59 = vsel %vm1589_vm11, %v1584_v57, %v1586_v54 }
  0xc9   : > { %v1588_v53 = vpop.permute.xlu0 %1587 }
  0xca   : > { %v1591_v56 = vsel %vm1589_vm11, %v1586_v54, %v1588_v53 }
  0xcb   : > { %2096 = vmatmul.mubr.msk.f32.vlgmr.msra.gmra.mrb[0].mxu1 %vm260_vm4, %v2013_v47 }
  0xcc   : > { %2099 = vmatpush3.msk.msra.mxu1 %vm264_vm2, %v1250_v42  ;;  %2100 = vmatprep.mubr.msk.f32.mxu1 %vm2345_vm1, %v2343_v3 }
  0xcd   : > { %2016 = vmatmul.mubr.msk.f32.vlgmr.msra.gmra.mrb[0].mxu0 %vm260_vm4, %v2013_v47  ;;  %2103 = vmatprep.subr.mxu1 %v2343_v3 }
  0xce   : > { %2021 = vmatpush1.msk.msra.mxu0 %vm264_vm2, %v1252_v49  ;;  %1327 = vmatprep.mubr.f32.mxu0 %v2343_v3 }
  0xcf   : > { %2026 = vmatprep.subr.msk.mxu0 %vm264_vm2, %v1422_v50 }
  0xd3   : > { %2101 = vmatmul.mubr.msk.f32.vlgmr.msra.gmra.mrb[0].mxu1 %vm260_vm4, %v2019_v52 }
  0xd4   : > { %2104 = vmatpush3.msk.msra.mxu1 %vm264_vm2, %v1419_v48  ;;  %2105 = vmatprep.mubr.msk.f32.mxu1 %vm2345_vm1, %v2343_v3 }
  0xd5   : > { %2022 = vmatmul.mubr.msk.f32.vlgmr.msra.gmra.mrb[0].mxu0 %vm260_vm4, %v2019_v52  ;;  %2108 = vmatprep.subr.mxu1 %v2343_v3 }
  0xd6   : > { %2027 = vmatpush1.msk.msra.mxu0 %vm264_vm2, %v1421_v55  ;;  %1496 = vmatprep.mubr.f32.mxu0 %v2343_v3 }
  0xd7   : > { %2032 = vmatprep.subr.msk.mxu0 %vm264_vm2, %v1591_v56 }
  0xdb   : > { %2106 = vmatmul.mubr.msk.f32.vlgmr.msra.gmra.mrb[0].mxu1 %vm260_vm4, %v2025_v58 }
  0xdc   : > { %2109 = vmatpush3.msk.msra.mxu1 %vm264_vm2, %v1588_v53  ;;  %2110 = vmatprep.mubr.msk.f32.mxu1 %vm2345_vm1, %v2343_v3  ;;  %vm1774_vm1 = vcmask 786048  }
  0xdd   : > { %2028 = vmatmul.mubr.msk.f32.vlgmr.msra.gmra.mrb[0].mxu0 %vm260_vm4, %v2025_v58 }
  0xde   : > { %2033 = vmatpush1.msk.msra.mxu0 %vm264_vm2, %v1590_v59  ;;  %1665 = vmatprep.mubr.f32.mxu0 %v2343_v3  ;;  %vm1779_vm2 = vcmask 917248  }
  0xe3   : > { %2111 = vmatmul.mubr.msk.f32.vlgmr.msra.gmra.mrb[0].mxu1 %vm260_vm4, %v2031_v60 }
  0xe5   : > { %2034 = vmatmul.mubr.msk.f32.vlgmr.msra.gmra.mrb[0].mxu0 %vm260_vm4, %v2031_v60  ;;  %vm1786_vm4 = vcmask 932864  }
 0x1b6   : > { %v1738_v61 = vpop.f32.mrb[0].mxu1 }
 0x1b7   : > { %1818 = vrot.lane.b32.xlu0 %v1738_v61, %s2352_s30  ;;  %v2112_v62 = vpop.f32.mrb[1].mxu1 }
 0x1b8   : > { %v1667_v63 = vpop.f32.mrb[0].mxu0 }
 0x1b9   : > { %1751 = vrot.lane.b32.xlu1 %v1667_v63, %s2344_s5  ;;  %v1669_v0 = vpop.f32.mrb[1].mxu0  ;;  %1749 = vst.msk [vmem:[%s2641_s9] sm:$0xff] %vm1748_vm12, %v1667_v63  ;;  %s2358_s5 = smov 118  }
 0x1bb   : > { %1782 = vrot.lane.b32.xlu0 %v1667_v63, %s2353_s11 }
 0x1bd   : > { %1756 = vrot.lane.b32.xlu1 %v1667_v63, %s2354_s12  ;;  %s2362_s12 = smov 102  }
 0x1bf   : > { %1791 = vrot.lane.b32.xlu0 %v1669_v0, %s2355_s13 }
 0x1c1   : > { %1761 = vrot.lane.b32.xlu1 %v1667_v63, %s2356_s14 }
 0x1c3   : > { %1795 = vrot.lane.b32.xlu0 %v1669_v0, %s2346_s6  ;;  %s2363_s6 = smov 98  }
 0x1c5   : > { %1766 = vrot.lane.b32.xlu1 %v1667_v63, %s2357_s23 }
 0x1c7   : > { %1799 = vrot.lane.b32.xlu0 %v1669_v0, %s2348_s10 }
 0x1c9   : > { %1771 = vrot.lane.b32.xlu1 %v1667_v63, %s2358_s5 }
 0x1cb   : > { %1803 = vrot.lane.b32.xlu0 %v1669_v0, %s2359_s24 }
 0x1cd   : > { %1776 = vrot.lane.b32.xlu1 %v1667_v63, %s2360_s8 }
 0x1cf   : > { %1807 = vrot.lane.b32.xlu0 %v1669_v0, %s2361_s0 }
 0x1d1   : > { %1816 = vrot.lane.b32.xlu1 %v1669_v0, %s2352_s30 }
 0x1d3   : > { %1811 = vrot.lane.b32.xlu0 %v1669_v0, %s2362_s12 }
 0x1d5   : > { %1784 = vrot.lane.b32.xlu1 %v1669_v0, %s2353_s11 }
 0x1d7   : > { %1824 = vrot.lane.b32.xlu0 %v1738_v61, %s2363_s6 }
 0x229   : > { %v1819_v1 = vpop.permute.xlu0 %1818 }
 0x22b   : > { %v1752_v2 = vpop.permute.xlu1 %1751 }
 0x22c   : > { %1755 = vst.msk [vmem:[%s2641_s9] sm:$0xff] %vm1754_vm13, %v1752_v2 }
 0x22d   : > { %v1783_v3 = vpop.permute.xlu0 %1782 }
 0x22f   : > { %v1757_v4 = vpop.permute.xlu1 %1756 }
 0x230   : > { %1760 = vst.msk [vmem:[%s2641_s9] sm:$0xff] %vm1759_vm14, %v1757_v4 }
 0x231   : > { %v1792_v5 = vpop.permute.xlu0 %1791 }
 0x232   : > { %1794 = vst.msk [vmem:[%s2641_s9 + $0x8] sm:$0xff] %vm1748_vm12, %v1792_v5 }
 0x233   : > { %v1762_v6 = vpop.permute.xlu1 %1761 }
 0x234   : > { %1765 = vst.msk [vmem:[%s2641_s9] sm:$0xff] %vm1764_vm15, %v1762_v6 }
 0x235   : > { %v1796_v7 = vpop.permute.xlu0 %1795 }
 0x236   : > { %1798 = vst.msk [vmem:[%s2641_s9 + $0x8] sm:$0xff] %vm1754_vm13, %v1796_v7 }
 0x237   : > { %v1767_v8 = vpop.permute.xlu1 %1766 }
 0x238   : > { %1770 = vst.msk [vmem:[%s2641_s9] sm:$0xff] %vm1769_vm0, %v1767_v8 }
 0x239   : > { %v1800_v9 = vpop.permute.xlu0 %1799 }
 0x23a   : > { %1802 = vst.msk [vmem:[%s2641_s9 + $0x8] sm:$0xff] %vm1759_vm14, %v1800_v9 }
 0x23b   : > { %v1772_v10 = vpop.permute.xlu1 %1771 }
 0x23c   : > { %1775 = vst.msk [vmem:[%s2641_s9] sm:$0xff] %vm1774_vm1, %v1772_v10 }
 0x23d   : > { %v1804_v11 = vpop.permute.xlu0 %1803 }
 0x23e   : > { %1806 = vst.msk [vmem:[%s2641_s9 + $0x8] sm:$0xff] %vm1764_vm15, %v1804_v11 }
 0x23f   : > { %v1777_v12 = vpop.permute.xlu1 %1776 }
 0x240   : > { %1780 = vst.msk [vmem:[%s2641_s9] sm:$0xff] %vm1779_vm2, %v1777_v12 }
 0x241   : > { %v1808_v13 = vpop.permute.xlu0 %1807 }
 0x242   : > { %1810 = vst.msk [vmem:[%s2641_s9 + $0x8] sm:$0xff] %vm1769_vm0, %v1808_v13 }
 0x243   : > { %v1817_v14 = vpop.permute.xlu1 %1816 }
 0x244   : > { %v1821_v16 = vsel %vm1820_vm3, %v1817_v14, %v1819_v1 }
 0x245   : > { %v1812_v15 = vpop.permute.xlu0 %1811 }
 0x246   : > { %1814 = vst.msk [vmem:[%s2641_s9 + $0x8] sm:$0xff] %vm1774_vm1, %v1812_v15 }
 0x247   : > { %1823 = vst.msk [vmem:[%s2641_s9 + $0x8] sm:$0xff] %vm1779_vm2, %v1821_v16  ;;  %v1785_v17 = vpop.permute.xlu1 %1784 }
 0x248   : > { %v1787_v18 = vsel %vm1786_vm4, %v1783_v3, %v1785_v17 }
 0x249   : > { %1790 = vst.msk [vmem:[%s2641_s9] sm:$0xff] %vm1789_vm5, %v1787_v18  ;;  %v1825_v19 = vpop.permute.xlu0 %1824 }
 0x24a   : > { %1827 = vst.msk [vmem:[%s2641_s9 + $0x8] sm:$0xff] %vm1789_vm5, %v1825_v19 }
 0x250   : > { %v1828_v20 = vld [vmem:[%s2641_s9] sm:$0xff] }
 0x251   : > { %v1829_v21 = vld [vmem:[%s2641_s9 + $0x8] sm:$0xff]  ;;  %v1838_v22 = vmul.f32 %v1828_v20, %v1828_v20 }
 0x252   : > { %v1831_v23 = vadd.f32 %v1829_v21, %v1828_v20  ;;  %v1839_v24 = vmul.f32 %v1829_v21, %v1829_v21 }
 0x254   : > { %1832 = vadd.xlane.f32.xlu1 %v1831_v23  ;;  %v1840_v25 = vadd.f32 %v1839_v24, %v1838_v22 }
 0x256   : > { %1841 = vadd.xlane.f32.xlu0 %v1840_v25 }
 0x2e1   : > { %v1833_v27 = vpop.xlane.xlu1 %1832 }
 0x2e2   : > { %v1834_v29 = vadd.f32 %v1833_v27, %v1830_v26 }
 0x2e3   : > { %v1842_v30 = vpop.xlane.xlu0 %1841 }
 0x2e4   : > { %1836 = vst.msk [vmem:[#allocation3] sm:$0xff] %vm1835_vm6, %v1834_v29  ;;  %v1843_v31 = vadd.f32 %v1842_v30, %v1837_v28 }
 0x2e6   : > { %1844 = vst.msk [vmem:[#allocation4] sm:$0xff] %vm1835_vm6, %v1843_v31 }
 0x2e7 PF: > { %p2039_p1 = scmp.ne.s32.totalorder %s2327_s19, 1 }
 0x2e8   : > { %v2364_v34 = vmov (!%p2039_p1), 0   ;;  %v1855_v40 = vld [vmem:[%s2735_s2] sm:$0xff] (!%p2039_p1)  ;;  %s2048_s9 = sshll.u32 (!%p2039_p1), %s2323_s18, 4 }
 0x2e9   : > { %1848 = sbr.rel (%p2039_p1) target bundleno = 906 (0x38a), region = 48  ;;  %2242 = vset.pattern.permute.xlu0 (!%p2039_p1), %v2364_v34  ;;  %v1859_v43 = vld [vmem:[%s2736_s3] sm:$0xff] (!%p2039_p1)  ;;  %s1864_s11 = scalar_lea.vmem (!%p2039_p1), [#allocation2], %s2048_s9 }
 0x2ea   : > { %v1865_v46 = vld [vmem:[%s1864_s11] sm:$0xff] (!%p2039_p1)  ;;  %v1866_v47 = vld [vmem:[%s1864_s11 + $0x8] sm:$0xff] (!%p2039_p1) }
 0x2eb   : > { %v1849_v32 = vld [vmem:[#allocation3] sm:$0xff] (!%p2039_p1) }
 0x2ec   : > { %v1850_v35 = vmul.f32 (!%p2039_p1), 0.001953125, %v1849_v32 }
 0x2ed   : > { %v1851_v33 = vld [vmem:[#allocation4] sm:$0xff] (!%p2039_p1) }
 0x2ee   : > { %v1852_v36 = vmul.f32 (!%p2039_p1), 0.001953125, %v1851_v33  ;;  %v1853_v37 = vmul.f32 (!%p2039_p1), %v1850_v35, %v1850_v35 }
 0x2f0   : > { %v1854_v38 = vsub.f32 %v1852_v36, %v1853_v37 }
 0x2f2   : > { %v1856_v39 = vadd.f32 1e-05, %v1854_v38 }
 0x2f4   : > { %2243 = vrsqrt.f32 %v1856_v39 }
 0x2fe   : > { %v2244_v41 = vpop.eup %2243 }
 0x2ff   : > { %v1858_v42 = vmul.f32 %v2244_v41, %v1855_v40 }
 0x301   : > { %1869 = vperm.xlu0 %2242, %v1858_v42   ;;  %v1860_v44 = vmul.f32 %v1858_v42, %v1850_v35 }
 0x303   : > { %v1861_v45 = vsub.f32 %v1859_v43, %v1860_v44 }
 0x305   : > { %1876 = vperm.xlu0 %2242, %v1861_v45  }
 0x380   : > { %v1870_v48 = vpop.permute.xlu0 %1869 }
 0x381   : > { %v1872_v49 = vmul.f32 %v1870_v48, %v1865_v46  ;;  %v1873_v50 = vmul.f32 %v1870_v48, %v1866_v47 }
 0x384   : > { %v1877_v51 = vpop.permute.xlu0 %1876 }
 0x385   : > { %v1879_v52 = vadd.f32 %v1877_v51, %v1872_v49  ;;  %v1880_v53 = vadd.f32 %v1877_v51, %v1873_v50 }
 0x387   : > { %v1881_v54 = vmax.f32 %v1879_v52, 0.0  ;;  %v1882_v55 = vmax.f32 %v1880_v53, 0.0 }
 0x389   : > { %1883 = vst [vmem:[%s2473_s27] sm:$0xff] %v1881_v54  ;;  %1884 = vst [vmem:[%s2473_s27 + $0x8] sm:$0xff] %v1882_v55 }
 0x38a PF: > { %s1893_s13 = smul.u32 %s2323_s18, %s2327_s19  ;;  %s1901_s14 = sshll.u32 %s2473_s27, 4  ;;  %s2682_s14 = int_to_ptr.vmem [resolvable:$true] %s1901_s14 }
 0x38b   : > { %s2743_s6 = sand.u32 1, %s2315_s16   ;;  %s2245_s8 = scalar_lea.vmem %s2682_s14, 256 }
 0x38c   : > { %s2049_s23 = sshll.u32 %s1893_s13, 8  ;;  %s1886_s0 = scalar_lea.sflag [#allocation6], %s2743_s6 }
 0x38d   : > { %s1899_s12 = scalar_lea.hbm %s2737_s4, %s2049_s23  ;;  %p2246_p2 = scmp.ne.s32.totalorder %s2682_s14, %s2245_s8 }
 0x38e   : > { %s2365_s10 = smov [#allocation5]  }
 0x38f   : > { %p2247_p3 = pnand %p2246_p2, %p2444_p6  ;;  %s2249_s18 = sshll.u32 %s2365_s10, 4  ;;  %s2250_s18 = int_to_ptr.vmem [resolvable:$false] %s2249_s18 }
 0x390   : > { %s2251_s19 = scalar_lea.vmem %s2250_s18, 512  ;;  %p2252_p5 = scmp.lt.s32.totalorder %s2682_s14, %s2250_s18 }
 0x391   : > { %p2248_p4 = pneg %p2247_p3  ;;  %p2253_p7 = scmp.lt.s32.totalorder %s2251_s19, %s2245_s8 }
 0x393   : > { %p2254_p9 = por %p2253_p7, %p2252_p5 }
 0x395   : > { %p2255_p10 = pnand %p2254_p9, %p2248_p4 }
 0x397   : > { %2258 = shalt.err (!%p2255_p10)
}
 0x398   : > { %s2259_s27 = scalar_lea.hbm %s1899_s12, 256  ;;  %s2263_s11 = scalar_lea.hbm %s2737_s4, 512 }
 0x399   : > { %p2260_p11 = scmp.ne.s32.totalorder %s1899_s12, %s2259_s27  ;;  %p2264_p0 = scmp.lt.u32.totalorder %s1899_s12, %s2737_s4 }
 0x39a   : > { %p2265_p1 = scmp.lt.u32.totalorder %s2263_s11, %s2259_s27  ;;  %p2267_p3 = scmp.lt.u32.totalorder %s2259_s27, %s1899_s12 }
 0x39b   : > { %p2261_p12 = pnand %p2260_p11, %p2444_p6 }
 0x39c   : > { %p2266_p2 = por %p2265_p1, %p2264_p0 }
 0x39d   : > { %p2262_p13 = pneg %p2261_p12 }
 0x39e   : > { %p2268_p5 = por %p2267_p3, %p2266_p2 }
 0x3a0   : > { %p2269_p4 = pnand %p2268_p5, %p2262_p13 }
 0x3a2   : > { %2272 = shalt.err (!%p2269_p4)
}
 0x3a3   : > { %2146 = dma.vmem_to_hbm [thread:$0]  (%p2444_p6), %s2682_s14, 256, %s1899_s12, %s1886_s0  }
 0x3a4 PF: > { %p2152_p7 = scmp.ge.s32.totalorder %s2339_s22, 2  ;;  %s1913_s5 = sand.u32 1, %s2311_s15  }
 0x3a5   : > { %s1914_s24 = scalar_lea.sflag [#allocation6], %s1913_s5 }
 0x3a6   : > { %p2149_p9 = pnand %p2152_p7, %p2451_p8 }
 0x3a8   : > { %2306 = dma.done.wait (!%p2149_p9), %s1914_s24, 256  }
 0x3a9   : > { %2308 = vsyncadd (!%p2149_p9), %s1914_s24, 4294967040  ;;  %s17_s22 = sadd.s32 1, %s2339_s22   ;;  %s2744_s15 = smov %s2315_s16 }
 0x3aa   : > { %p14_p10 = scmp.ge.s32.totalorder %s17_s22, 6   ;;  %s2745_s16 = smov %s2319_s17 }
 0x3ab   : > { %s2746_s17 = smov %s2460_s7  ;;  %s2747_s18 = smov %s2331_s20 }
 0x3ac   : > { %s2748_s19 = smov %s2335_s21  ;;  %s2749_s20 = smov %s2752_s25 }
 0x3ad   : > { %s2750_s21 = smov %s2756_s26  ;;  %16 = sbr.rel (!%p14_p10) target bundleno = 7 (0x7), region = 93 }
 0x3b4   :  { %1919 = vsyncpa [#allocation6], 1 }
 0x3b5   :  { %1921 = vsyncpa [#allocation6 + $0x1], 1 }

</bundles_post_ra>
